<compile_context>
chip_gen: v6e
topology: v6e:2x2x1
jax: 0.10.0
libtpu: 0.0.40
codegen_flags: <defaults>
</compile_context>

<pallas_src>
import numpy as np
import jax
import jax.numpy as jnp
from jax.experimental import pallas as pl
from jax.experimental.pallas import tpu as pltpu


# ----------------------------------------------------------------------------
# NectoAction.make_lookup_table()  (deterministic, 90 actions x 8 components)
# ----------------------------------------------------------------------------
def make_lookup_table():
    actions = []
    # Ground
    for throttle in (-1, 0, 1):
        for steer in (-1, 0, 1):
            for boost in (0, 1):
                for handbrake in (0, 1):
                    if boost == 1 and throttle != 1:
                        continue
                    actions.append([throttle or boost, steer, 0, steer, 0, 0, boost, handbrake])
    # Aerial
    for pitch in (-1, 0, 1):
        for yaw in (-1, 0, 1):
            for roll in (-1, 0, 1):
                for jump in (0, 1):
                    for boost in (0, 1):
                        if jump == 1 and yaw != 0:
                            continue
                        if pitch == roll == jump == 0:
                            continue
                        handbrake = jump == 1 and (pitch != 0 or yaw != 0 or roll != 0)
                        actions.append([boost, yaw, pitch, yaw, roll, jump, boost, handbrake])
    return np.array(actions, dtype=np.float32)


def _round_up(x, m):
    return ((x + m - 1) // m) * m


# ----------------------------------------------------------------------------
# Pallas kernel: one lane-dense matmul + bias per row-tile.
#   player_ref : (tile_n, Din)   f32 (cast to bf16 in-kernel, in vregs)
#   w_ref      : (Din, A_pad)    bf16   (= Wc @ act_emb.T, zero-padded to 128)
#   b_ref      : (1, A_pad)      f32    (= bc @ act_emb.T, zero-padded)
#   out_ref    : (tile_n, A_pad) out_dtype (bf16 by default)
# ----------------------------------------------------------------------------
def controls_predictor_kernel(player_ref, w_ref, b_ref, out_ref):
    x = player_ref[...].astype(jnp.bfloat16)            # in-kernel cast (free under HBM bound)
    acc = jnp.dot(x, w_ref[...], preferred_element_type=jnp.float32)
    out_ref[...] = (acc + b_ref[...]).astype(out_ref.dtype)


def controls_predictor_dot(player_emb, params, actions, *, tile_n=8192,
                           out_dtype=jnp.bfloat16, slice_output=True):
    """player_emb: (B, P, Din); actions: (A, 8) f32.

    Returns (B, P, A) if slice_output else (B, P, A_pad) where columns >= A are
    exact zeros (pass out_dtype=jnp.float32 for full-precision output).
    """
    B, P, Din = player_emb.shape
    A, _ = actions.shape
    A_pad = pl.cdiv(A, 128) * 128  # lane-dense output (90 -> 128)

    # ---- one-shot constant precompute (plain JAX / XLA, f32, tiny) ----------
    h = jnp.maximum(actions @ params["w1"] + params["b1"], 0.0)  # (A, H)
    act_emb = h @ params["w2"] + params["b2"]                    # (A, F)
    w_fused = params["wc"] @ act_emb.T                           # (Din, A)
    b_fused = params["bc"] @ act_emb.T                           # (1, A)
    w_fused = jnp.pad(w_fused, ((0, 0), (0, A_pad - A))).astype(jnp.bfloat16)
    b_fused = jnp.pad(b_fused, ((0, 0), (0, A_pad - A)))         # stays f32

    # ---- row tiling (no input padding; ragged last tile handled by Pallas) --
    N = B * P
    flat = player_emb.reshape(N, Din)          # contiguous reshape: no copy
    if N >= 16:
        # Big tiles amortize per-step overhead; keep >= 2 grid steps so v7x's
        # two TensorCores both get work under dimension_semantics=("parallel",).
        tn = min(_round_up(tile_n, 8), _round_up(pl.cdiv(N, 2), 8))
    else:
        tn = N                                  # single full-extent block
    grid = (pl.cdiv(N, tn),)

    # ---- VMEM sizing: only raise the scoped limit when we would exceed the
    # smallest default (v5e: 16 MiB), e.g. f32 output at very large tiles. ----
    in_itemsize = jnp.dtype(player_emb.dtype).itemsize
    out_itemsize = jnp.dtype(out_dtype).itemsize
    vmem_est = (2 * tn * (Din * in_itemsize + A_pad * out_itemsize)
                + 2 * (Din * A_pad * 2 + A_pad * 4))
    compiler_kwargs = dict(dimension_semantics=("parallel",))
    if vmem_est > 14 * 1024 * 1024:
        compiler_kwargs["vmem_limit_bytes"] = int(vmem_est) + (4 << 20)

    out = pl.pallas_call(
        controls_predictor_kernel,
        out_shape=jax.ShapeDtypeStruct((N, A_pad), out_dtype),
        grid_spec=pltpu.PrefetchScalarGridSpec(
            num_scalar_prefetch=0,
            grid=grid,
            in_specs=[
                pl.BlockSpec((tn, Din), lambda i: (i, 0)),      # player rows (tiled)
                pl.BlockSpec((Din, A_pad), lambda i: (0, 0)),   # fused weight (resident)
                pl.BlockSpec((1, A_pad), lambda i: (0, 0)),     # fused bias (resident)
            ],
            out_specs=pl.BlockSpec((tn, A_pad), lambda i: (i, 0)),
        ),
        compiler_params=pltpu.CompilerParams(**compiler_kwargs),
    )(flat, w_fused, b_fused)

    out = out.reshape(B, P, A_pad)              # contiguous reshape: no copy
    if slice_output:
        return out[:, :, :A]                    # module-exact shape (extra copy)
    return out                                  # columns >= A are exact zeros


# ----------------------------------------------------------------------------
# Deterministic parameter init (xavier-uniform weights, zero biases)
# ----------------------------------------------------------------------------
def xavier_uniform(key, fan_in, fan_out):
    limit = np.sqrt(6.0 / (fan_in + fan_out))
    return jax.random.uniform(key, (fan_in, fan_out), jnp.float32, -limit, limit)


def init_params(key, in_features, features, hidden):
    k1, k2, k3 = jax.random.split(key, 3)
    return {
        "wc": xavier_uniform(k1, in_features, features),
        "bc": jnp.zeros((1, features), jnp.float32),
        "w1": xavier_uniform(k2, 8, hidden),
        "b1": jnp.zeros((1, hidden), jnp.float32),
        "w2": xavier_uniform(k3, hidden, features),
        "b2": jnp.zeros((1, features), jnp.float32),
    }


def reference_numpy(player_emb, params, actions):
    pe = np.asarray(player_emb) @ np.asarray(params["wc"]) + np.asarray(params["bc"])[0]
    h = np.maximum(np.asarray(actions) @ np.asarray(params["w1"]) + np.asarray(params["b1"])[0], 0.0)
    ae = h @ np.asarray(params["w2"]) + np.asarray(params["b2"])[0]
    return np.einsum("ad,bpd->bpa", ae, pe)


if __name__ == "__main__":
    key = jax.random.PRNGKey(0)
    k_param, k_x1, k_x2 = jax.random.split(key, 3)

    in_features = 64       # player embedding width
    features = 32          # dot-product embedding width
    hidden = in_features   # mlp(8, in_features, layers=1, features)

    params = init_params(k_param, in_features, features, hidden)
    actions = jnp.asarray(make_lookup_table())            # (90, 8)
    A = actions.shape[0]

    # Case 1: tiny batch (N=6) -> single full-extent row block.
    B1, P1 = 2, 3
    x1 = jax.random.normal(k_x1, (B1, P1, in_features), jnp.float32)
    out1 = jax.block_until_ready(controls_predictor_dot(x1, params, actions))
    ref1 = reference_numpy(x1, params, actions)
    assert out1.shape == (B1, P1, A), out1.shape
    err1 = float(np.max(np.abs(np.asarray(out1, dtype=np.float32) - ref1)))
    # bf16 matmul inputs + bf16 output (f32 accumulation) -> loosened tolerance.
    assert np.allclose(np.asarray(out1, dtype=np.float32), ref1,
                       rtol=5e-2, atol=2.5e-1), "max abs diff = %g" % err1

    # Case 2: ragged multi-step grid (N=20 rows, two 16-row tiles, last partial)
    # exercises the masked-boundary path that replaced the jnp.pad input copy.
    B2, P2 = 4, 5
    x2 = jax.random.normal(k_x2, (B2, P2, in_features), jnp.float32)
    out2 = jax.block_until_ready(
        controls_predictor_dot(x2, params, actions, tile_n=16))
    ref2 = reference_numpy(x2, params, actions)
    assert out2.shape == (B2, P2, A), out2.shape
    err2 = float(np.max(np.abs(np.asarray(out2, dtype=np.float32) - ref2)))
    assert np.allclose(np.asarray(out2, dtype=np.float32), ref2,
                       rtol=5e-2, atol=2.5e-1), "max abs diff = %g" % err2

    print("KERNEL_OK")
</pallas_src>

<mosaic_0001>
module attributes {stable_mosaic.version = 11 : i64} {
  func.func @controls_predictor_kernel(%arg0: i32, %arg1: memref<6x64xf32, #tpu.memory_space<vmem>>, %arg2: memref<64x128xbf16, #tpu.memory_space<vmem>>, %arg3: memref<1x128xf32, #tpu.memory_space<vmem>>, %arg4: memref<6x128xbf16, #tpu.memory_space<vmem>>) attributes {dimension_semantics = [#tpu.dimension_semantics<parallel>], iteration_bounds = array<i64: 1>, scalar_prefetch = 0 : i64, scratch_operands = 0 : i64, tpu.core_type = #tpu.core_type<tc>, window_params = [{transform_indices = @transform_0, window_bounds = array<i64: 6, 64>}, {pipeline_mode = #tpu.pipeline_mode<synchronous>, transform_indices = @transform_1, window_bounds = array<i64: 64, 128>}, {pipeline_mode = #tpu.pipeline_mode<synchronous>, transform_indices = @transform_2, window_bounds = array<i64: 1, 128>}, {transform_indices = @transform_3, window_bounds = array<i64: 6, 128>}]} {
    %c0 = arith.constant 0 : index
    %c0_0 = arith.constant 0 : index
    %0 = vector.load %arg1[%c0, %c0_0] : memref<6x64xf32, #tpu.memory_space<vmem>>, vector<6x64xf32>
    %1 = arith.truncf %0 : vector<6x64xf32> to vector<6x64xbf16>
    %c0_1 = arith.constant 0 : index
    %c0_2 = arith.constant 0 : index
    %2 = vector.load %arg2[%c0_1, %c0_2] : memref<64x128xbf16, #tpu.memory_space<vmem>>, vector<64x128xbf16>
    %cst = arith.constant dense<0.000000e+00> : vector<6x128xf32>
    %3 = tpu.matmul %1, %2, %cst {dimension_numbers = #tpu.dot_dimension_numbers<[1], [0], [0], [1], [0, 0, 1, 1], [], []>} : vector<6x64xbf16>, vector<64x128xbf16>, vector<6x128xf32> -> vector<6x128xf32>
    %c0_3 = arith.constant 0 : index
    %c0_4 = arith.constant 0 : index
    %4 = vector.load %arg3[%c0_3, %c0_4] : memref<1x128xf32, #tpu.memory_space<vmem>>, vector<1x128xf32>
    %5 = vector.broadcast %4 : vector<1x128xf32> to vector<6x128xf32>
    %6 = arith.addf %3, %5 : vector<6x128xf32>
    %7 = arith.truncf %6 : vector<6x128xf32> to vector<6x128xbf16>
    %c0_5 = arith.constant 0 : index
    %c0_6 = arith.constant 0 : index
    %8 = vector.load %arg4[%c0_5, %c0_6] : memref<6x128xbf16, #tpu.memory_space<vmem>>, vector<6x128xbf16>
    tpu.vector_store %arg4[%c0_5, %c0_6], %7 {strides = array<i32>} : memref<6x128xbf16, #tpu.memory_space<vmem>>, vector<6x128xbf16>,
    return
  }
  func.func @transform_0(%arg0: i32) -> (i32, i32) {
    %c0_i32 = arith.constant 0 : i32
    %c0_i32_0 = arith.constant 0 : i32
    return %arg0, %c0_i32 : i32, i32
  }
  func.func @transform_1(%arg0: i32) -> (i32, i32) {
    %c0_i32 = arith.constant 0 : i32
    %c0_i32_0 = arith.constant 0 : i32
    %c0_i32_1 = arith.constant 0 : i32
    return %c0_i32, %c0_i32_0 : i32, i32
  }
  func.func @transform_2(%arg0: i32) -> (i32, i32) {
    %c0_i32 = arith.constant 0 : i32
    %c0_i32_0 = arith.constant 0 : i32
    %c0_i32_1 = arith.constant 0 : i32
    return %c0_i32, %c0_i32_0 : i32, i32
  }
  func.func @transform_3(%arg0: i32) -> (i32, i32) {
    %c0_i32 = arith.constant 0 : i32
    %c0_i32_0 = arith.constant 0 : i32
    return %arg0, %c0_i32 : i32, i32
  }
}

</mosaic_0001>

<bundles_post_ra>
// kernel: tpu_custom_call.1
= control target key start
LH: loop header
LB: loop body
LE: loop exit
PB: predicated region body
PF: predicated region fallthrough
CT: control target
= control target key end

     0   :  { %8 = vsyncpa [#allocation3], 0  ;;  %s284_s0 = inlined_call_operand.hbm [shape: f32[6,64], index: 0, kind: input, shape index: {}]   ;;  %s285_s1 = inlined_call_operand.hbm [shape: bf16[64,128], index: 1, kind: input, shape index: {}]   ;;  %s286_s2 = inlined_call_operand.vmem [shape: f32[1,128], index: 2, kind: input, shape index: {}]   ;;  %s287_s3 = inlined_call_operand.hbm [shape: bf16[6,128], index: 3, kind: output, shape index: {}]  }
   0x1   :  { %9 = vsyncpa [#allocation6], 0 }
   0x2   :  { %10 = vsyncpa [#allocation4], 0  ;;  %s245_s12 = smov [#allocation2]   ;;  %s246_s14 = smov [#allocation5]  }
   0x3   :  { %s17_s13 = sshll.u32 %s245_s12, 4  ;;  %s26_s15 = sshll.u32 %s246_s14, 4  ;;  %s18_s13 = int_to_ptr.vmem [resolvable:$true] %s17_s13  ;;  %s27_s15 = int_to_ptr.vmem [resolvable:$true] %s26_s15 }
   0x4   :  { %s187_s16 = scalar_lea.vmem %s18_s13, 128  ;;  %p192_p1 = scmp.lt.s32.totalorder %s18_s13, %s18_s13 }
   0x5   :  { %p188_p0 = scmp.ne.s32.totalorder %s18_s13, %s187_s16  ;;  %p193_p2 = scmp.lt.s32.totalorder %s187_s16, %s187_s16 }
   0x7   :  { %p194_p3 = por %p193_p2, %p192_p1 }
   0x9   :  { %p195_p4 = pnand %p194_p3, %p188_p0 }
   0xb   :  { %198 = shalt.err (!%p195_p4)
}
   0xc   :  { %20 = dma.hbm_to_vmem [thread:$0]  %s284_s0, 128, %s18_s13, [#allocation3]  }
   0xd   :  { %s207_s19 = scalar_lea.vmem %s27_s15, 512  ;;  %p212_p6 = scmp.lt.s32.totalorder %s27_s15, %s27_s15 }
   0xe   :  { %p208_p5 = scmp.ne.s32.totalorder %s27_s15, %s207_s19  ;;  %p213_p7 = scmp.lt.s32.totalorder %s207_s19, %s207_s19 }
  0x10   :  { %p214_p8 = por %p213_p7, %p212_p6 }
  0x12   :  { %p215_p9 = pnand %p214_p8, %p208_p5 }
  0x14   :  { %218 = shalt.err (!%p215_p9)
}
  0x15   :  { %s247_s20 = smov 64   ;;  %s248_s21 = smov 4  }
  0x16   :  { %32 = dma.hbm_to_vmem [thread:$0]  %s285_s1, 512, %s27_s15, [#allocation6], %s247_s20, %s247_s20, %s248_s21  }
  0x17   :  { %239 = dma.done.wait [#allocation3], 128  }
  0x18   :  { %240 = vsyncadd [#allocation3], 4294967168 }
  0x19   :  { %241 = dma.done.wait [#allocation6], 512  }
  0x1a   :  { %242 = vsyncadd [#allocation6], 4294966784  ;;  %v249_v0 = vmov 0.0   ;;  %vm250_vm0 = vmmov 0   ;;  %v175_v1 = vld [vmem:[#allocation5 + $0x18] sm:$0xff]   ;;  %v176_v2 = vld [vmem:[#allocation5 + $0x10] sm:$0xff]  }
  0x1b   :  { %156 = vmatprep.subr.bf16.mxu0 %v249_v0  ;;  %164 = vmatprep.mubr.msk.bf16.mxu0 %vm250_vm0, %v249_v0  ;;  %v177_v3 = vld [vmem:[#allocation5 + $0x8] sm:$0xff]   ;;  %v178_v4 = vld [vmem:[#allocation5] sm:$0xff]   ;;  %v42_v5 = vld [vmem:[#allocation2] sm:$0x3f]  ;;  %vm83_vm1 = vcmask 523264   ;;  %s251_s24 = smov [#allocation7]  }
  0x1c   :  { %157 = vmatpush3.bf16.msra.mxu0 %v175_v1  ;;  %v43_v6 = vpack.c.bf16 %v42_v5, %v42_v5  ;;  %v145_v7 = vld [vmem:[%s286_s2] ss:$0 sm:$0xff]  ;;  %s135_s25 = sshll.u32 %s251_s24, 4  ;;  %s136_s25 = int_to_ptr.vmem [resolvable:$true] %s135_s25 }
  0x1d   :  { %158 = vmatprep.subr.bf16.mxu0 %v249_v0  ;;  %s219_s26 = scalar_lea.vmem %s136_s25, 64  ;;  %p224_p11 = scmp.lt.s32.totalorder %s136_s25, %s136_s25 }
  0x1e   :  { %p220_p10 = scmp.ne.s32.totalorder %s136_s25, %s219_s26  ;;  %p225_p12 = scmp.lt.s32.totalorder %s219_s26, %s219_s26 }
  0x20   :  { %159 = vmatpush3.bf16.msra.mxu0 %v176_v2  ;;  %p226_p13 = por %p225_p12, %p224_p11 }
  0x21   :  { %160 = vmatprep.subr.bf16.mxu0 %v249_v0 }
  0x22   :  { %p227_p0 = pnand %p226_p13, %p220_p10 }
  0x24   :  { %161 = vmatpush3.bf16.msra.mxu0 %v177_v3 }
  0x25   :  { %162 = vmatprep.subr.bf16.mxu0 %v249_v0 }
  0x28   :  { %163 = vmatpush3.bf16.msra.mxu0 %v178_v4 }
  0x2b   :  { %165 = vmatmul.mubr.msk.bf16.vlgmr.msra.gmra.mxu0 %vm83_vm1, %v43_v6 }
  0xeb   :  { %v121_v8 = vpop.f32.mrf.mxu0 }
  0xec   :  { %v122_v9 = vadd.f32 %v145_v7, %v121_v8 }
  0xed   :  { %v166_v10 = vpop.f32.mrf.mxu0 }
  0xee   :  { %v127_v11 = vpack.c.bf16 %v122_v9, %v122_v9 }
  0xef   :  { %v124_v12 = vpop.f32.mrf.mxu0 }
  0xf0   :  { %128 = vst [vmem:[#allocation7] sm:$0x7] %v127_v11 }
  0xf1   :  { %v167_v13 = vpop.f32.mrf.mxu0 }
  0xf2   :  { %230 = shalt.err (!%p227_p0)
}
  0xf3   :  { %138 = dma.vmem_to_hbm [thread:$0]  %s136_s25, 64, %s287_s3, [#allocation4]  }
  0xf4   :  { %243 = dma.done.wait [#allocation4], 64  }
  0xf5   :  { %244 = vsyncadd [#allocation4], 4294967232 }
  0xf6   :  { %142 = vsyncpa [#allocation3], 1 }
  0xf7   :  { %143 = vsyncpa [#allocation6], 1 }
  0xf8   :  { %144 = vsyncpa [#allocation4], 1 }

</bundles_post_ra>
